<compile_context>
chip_gen: v7x
topology: tpu7x:2x2x1
jax: 0.10.0
libtpu: 0.0.40
codegen_flags: <defaults>
</compile_context>

<pallas_src>
import functools

import jax
import jax.numpy as jnp
from jax import lax
from jax.experimental import pallas as pl
from jax.experimental.pallas import tpu as pltpu

_MASK_VALUE = -1.0e30  # large finite negative; safer than -inf for the mask


def _round_up(x, m):
    return (x + m - 1) // m * m


def _cdiv(a, b):
    return -(-a // b)


def _flash_sdpa_kernel(q_ref, k_ref, v_ref, o_ref,
                       q_sc, m_sc, l_sc, acc_sc, *,
                       scale, kv_tile, lk, lk_pad, bf16_exp):
    kv = pl.program_id(2)

    @pl.when(kv == 0)
    def _():
        # Hoisted once per (batch, q-tile): load q, fold in scale.
        q = q_ref[0]
        if scale:  # PyTorch truthiness: None / 0.0 skip the scaling
            q = q * jnp.asarray(scale, dtype=q.dtype)
        q_sc[...] = q.astype(q_sc.dtype)
        m_sc[...] = jnp.full(m_sc.shape, -jnp.inf, dtype=m_sc.dtype)
        l_sc[...] = jnp.zeros_like(l_sc)
        acc_sc[...] = jnp.zeros_like(acc_sc)

    q = q_sc[...]          # [tq,  D]
    k = k_ref[0]           # [tkv, D]
    v = v_ref[0]           # [tkv, Dv]

    # scores = Q @ K^T expressed as a contracting-dim dot (no K transpose).
    s = lax.dot_general(
        q, k,
        dimension_numbers=(((1,), (1,)), ((), ())),
        preferred_element_type=jnp.float32)                       # [tq, tkv]

    # Mask padded key positions (only present when Lk was padded; only the
    # last kv tile can be partial, and it always holds >= 1 real key).
    if lk_pad != lk:
        key_idx = kv * kv_tile + lax.broadcasted_iota(jnp.int32, s.shape, 1)
        s = jnp.where(key_idx < lk, s, _MASK_VALUE)

    # Online (flash) softmax update; running stats stay in f32.
    m_prev = m_sc[...]
    m_new = jnp.maximum(m_prev, jnp.max(s, axis=-1, keepdims=True))
    alpha = jnp.exp(m_prev - m_new)
    if bf16_exp:
        # bf16 exp halves the single-EUP-port cost on v6e/v7x; keep the
        # denominator accumulation in f32.
        # TODO(synk): gate off on v5e (no bf16 EUP) via a hardware query.
        p = jnp.exp((s - m_new).astype(jnp.bfloat16))              # [tq, tkv]
        p_sum = jnp.sum(p.astype(jnp.float32), axis=-1, keepdims=True)
    else:
        p = jnp.exp(s - m_new)                                     # [tq, tkv]
        p_sum = jnp.sum(p, axis=-1, keepdims=True)

    l_sc[...] = alpha * l_sc[...] + p_sum
    acc_sc[...] = alpha * acc_sc[...] + jnp.dot(
        p.astype(v.dtype), v, preferred_element_type=jnp.float32)
    m_sc[...] = m_new

    @pl.when(kv == pl.num_programs(2) - 1)
    def _():
        if o_ref.dtype == jnp.bfloat16:
            inv_l = pl.reciprocal(l_sc[...], approx=True)   # EUP, ~free
        else:
            inv_l = 1.0 / l_sc[...]                         # exact for f32 out
        o_ref[0] = (acc_sc[...] * inv_l).astype(o_ref.dtype)


def scaled_dot_product_attention(Q, K, V, scale=None, *, q_tile=None, kv_tile=None):
    """Pallas equivalent of Scaled_Dot_Product_Attention.forward."""
    B, Lq, D = Q.shape
    Bk, Lk, Dk = K.shape
    Bv, Lv, Dv = V.shape
    assert B == Bk == Bv and D == Dk and Lk == Lv

    # Default tiles: large enough for the v6e/v7x rooflines, small padding
    # waste, and >= 2 parallel grid slices so both v7x TensorCores stay busy.
    if q_tile is None:
        nq_target = max(1, _cdiv(Lq, 512))
        if B * nq_target < 2 and Lq > 8:          # megacore occupancy (v7x)
            nq_target = 2
        q_tile = _round_up(_cdiv(Lq, nq_target), 8)
    else:
        q_tile = _round_up(q_tile, 8)
    if kv_tile is None:
        nkv_target = max(1, _cdiv(Lk, 1024))
        kv_tile = _round_up(_cdiv(Lk, nkv_target), 8)
    else:
        kv_tile = _round_up(kv_tile, 8)

    # Pad only the sequence dims, and only when they don't divide the tile.
    Lq_pad = _round_up(Lq, q_tile)
    Lk_pad = _round_up(Lk, kv_tile)
    Qp = jnp.pad(Q, ((0, 0), (0, Lq_pad - Lq), (0, 0))) if Lq_pad != Lq else Q
    Kp = jnp.pad(K, ((0, 0), (0, Lk_pad - Lk), (0, 0))) if Lk_pad != Lk else K
    Vp = jnp.pad(V, ((0, 0), (0, Lk_pad - Lk), (0, 0))) if Lk_pad != Lk else V

    nq = Lq_pad // q_tile
    nkv = Lk_pad // kv_tile

    bf16_exp = (Q.dtype == jnp.bfloat16)

    kernel = functools.partial(_flash_sdpa_kernel, scale=scale,
                               kv_tile=kv_tile, lk=Lk, lk_pad=Lk_pad,
                               bf16_exp=bf16_exp)

    out = pl.pallas_call(
        kernel,
        out_shape=jax.ShapeDtypeStruct((B, Lq_pad, Dv), Q.dtype),
        grid_spec=pltpu.PrefetchScalarGridSpec(
            num_scalar_prefetch=0,
            grid=(B, nq, nkv),                      # kv reduction axis last
            in_specs=[
                pl.BlockSpec((1, q_tile, D), lambda b, qi, ki: (b, qi, 0)),
                pl.BlockSpec((1, kv_tile, D), lambda b, qi, ki: (b, ki, 0)),
                pl.BlockSpec((1, kv_tile, Dv), lambda b, qi, ki: (b, ki, 0)),
            ],
            out_specs=pl.BlockSpec((1, q_tile, Dv),
                                   lambda b, qi, ki: (b, qi, 0)),
            scratch_shapes=[
                pltpu.VMEM((q_tile, D), Q.dtype),           # scaled q (hoisted)
                pltpu.VMEM((q_tile, 1), jnp.float32),       # running max
                pltpu.VMEM((q_tile, 1), jnp.float32),       # running denom
                pltpu.VMEM((q_tile, Dv), jnp.float32),      # running context
            ],
        ),
        compiler_params=pltpu.CompilerParams(
            dimension_semantics=("parallel", "parallel", "arbitrary"),
        ),
    )(Qp, Kp, Vp)

    if Lq_pad != Lq:
        out = out[:, :Lq, :]
    return out


def _reference(Q, K, V, scale=None):
    scores = jnp.einsum("bqd,bkd->bqk", Q.astype(jnp.float32),
                        K.astype(jnp.float32))
    if scale:  # matches PyTorch truthiness
        scores = scores * scale
    p = jax.nn.softmax(scores, axis=-1)
    return jnp.einsum("bqk,bkd->bqd", p, V.astype(jnp.float32))


if __name__ == "__main__":
    key = jax.random.PRNGKey(0)
    kq, kk, kv_key = jax.random.split(key, 3)

    # Small shapes consistent with the module.
    B, Lq, Lk, D, Dv = 2, 8, 8, 32, 32
    Q = jax.random.normal(kq, (B, Lq, D), dtype=jnp.float32)
    K = jax.random.normal(kk, (B, Lk, D), dtype=jnp.float32)
    V = jax.random.normal(kv_key, (B, Lk, Dv), dtype=jnp.float32)
    scale = 1.0 / (D ** 0.5)

    out = jax.block_until_ready(scaled_dot_product_attention(Q, K, V, scale=scale))
    ref = _reference(Q, K, V, scale=scale)
    assert out.shape == (B, Lq, Dv)
    assert jnp.allclose(out, ref, atol=2e-3, rtol=2e-3), "mismatch vs reference"

    # scale=None path (PyTorch's `if scale:` falsy branch) — exact reciprocal.
    out2 = jax.block_until_ready(scaled_dot_product_attention(Q, K, V, scale=None))
    ref2 = _reference(Q, K, V, scale=None)
    assert jnp.allclose(out2, ref2, atol=2e-3, rtol=2e-3), "mismatch (no scale)"

    # Flash accumulation (multiple kv tiles) + padded-key masking with ragged,
    # non-128 head dims (no head-dim padding anymore).
    B2, Lq2, Lk2, D2, Dv2 = 2, 16, 20, 40, 24
    Q2 = jax.random.normal(kq, (B2, Lq2, D2), dtype=jnp.float32)
    K2 = jax.random.normal(kk, (B2, Lk2, D2), dtype=jnp.float32)
    V2 = jax.random.normal(kv_key, (B2, Lk2, Dv2), dtype=jnp.float32)
    out3 = jax.block_until_ready(
        scaled_dot_product_attention(Q2, K2, V2, scale=1.0 / (D2 ** 0.5),
                                     q_tile=8, kv_tile=8))
    ref3 = _reference(Q2, K2, V2, scale=1.0 / (D2 ** 0.5))
    assert out3.shape == (B2, Lq2, Dv2)
    assert jnp.allclose(out3, ref3, atol=2e-3, rtol=2e-3), "mismatch (tiled/masked)"

    # bf16 path (bf16 exp + approx reciprocal on bf16 output) — loose tolerance.
    Qb = Q.astype(jnp.bfloat16)
    Kb = K.astype(jnp.bfloat16)
    Vb = V.astype(jnp.bfloat16)
    out4 = jax.block_until_ready(
        scaled_dot_product_attention(Qb, Kb, Vb, scale=scale))
    ref4 = _reference(Qb, Kb, Vb, scale=scale)
    assert jnp.allclose(out4.astype(jnp.float32), ref4,
                        atol=5e-2, rtol=5e-2), "mismatch (bf16)"

    print("KERNEL_OK")
</pallas_src>

<mosaic_0001>
module attributes {stable_mosaic.version = 11 : i64} {
  func.func @_flash_sdpa_kernel(%arg0: i32, %arg1: i32, %arg2: i32, %arg3: memref<1x8x32xf32, #tpu.memory_space<vmem>>, %arg4: memref<1x8x32xf32, #tpu.memory_space<vmem>>, %arg5: memref<1x8x32xf32, #tpu.memory_space<vmem>>, %arg6: memref<1x8x32xf32, #tpu.memory_space<vmem>>, %arg7: memref<8x32xf32, #tpu.memory_space<vmem>>, %arg8: memref<8x1xf32, #tpu.memory_space<vmem>>, %arg9: memref<8x1xf32, #tpu.memory_space<vmem>>, %arg10: memref<8x32xf32, #tpu.memory_space<vmem>>) attributes {dimension_semantics = [#tpu.dimension_semantics<parallel>, #tpu.dimension_semantics<parallel>, #tpu.dimension_semantics<arbitrary>], iteration_bounds = array<i64: 2, 1, 1>, scalar_prefetch = 0 : i64, scratch_operands = 4 : i64, tpu.core_type = #tpu.core_type<tc>, window_params = [{transform_indices = @transform_0, window_bounds = array<i64: 1, 8, 32>}, {transform_indices = @transform_1, window_bounds = array<i64: 1, 8, 32>}, {transform_indices = @transform_2, window_bounds = array<i64: 1, 8, 32>}, {transform_indices = @transform_3, window_bounds = array<i64: 1, 8, 32>}]} {
    %c0_i32 = arith.constant 0 : i32
    %0 = arith.cmpi eq, %arg2, %c0_i32 : i32
    %1 = arith.extui %0 : i1 to i32
    %c0_i32_0 = arith.constant 0 : i32
    %2 = arith.cmpi ne, %1, %c0_i32_0 : i32
    scf.if %2 {
      %c0_25 = arith.constant 0 : index
      %c0_26 = arith.constant 0 : index
      %c0_27 = arith.constant 0 : index
      %34 = vector.load %arg3[%c0_25, %c0_26, %c0_27] : memref<1x8x32xf32, #tpu.memory_space<vmem>>, vector<1x8x32xf32>
      %35 = vector.shape_cast %34 : vector<1x8x32xf32> to vector<8x32xf32>
      %cst_28 = arith.constant 0.176776692 : f32
      %36 = vector.broadcast %cst_28 : f32 to vector<8x32xf32>
      %37 = arith.mulf %35, %36 : vector<8x32xf32>
      %c0_29 = arith.constant 0 : index
      %c0_30 = arith.constant 0 : index
      %38 = vector.load %arg7[%c0_29, %c0_30] : memref<8x32xf32, #tpu.memory_space<vmem>>, vector<8x32xf32>
      tpu.vector_store %arg7[%c0_29, %c0_30], %37 {strides = array<i32>} : memref<8x32xf32, #tpu.memory_space<vmem>>, vector<8x32xf32>,
      %cst_31 = arith.constant 0xFF800000 : f32
      %39 = vector.broadcast %cst_31 : f32 to vector<8x1xf32>
      %c0_32 = arith.constant 0 : index
      %c0_33 = arith.constant 0 : index
      %40 = vector.load %arg8[%c0_32, %c0_33] : memref<8x1xf32, #tpu.memory_space<vmem>>, vector<8x1xf32>
      tpu.vector_store %arg8[%c0_32, %c0_33], %39 {strides = array<i32>} : memref<8x1xf32, #tpu.memory_space<vmem>>, vector<8x1xf32>,
      %cst_34 = arith.constant 0.000000e+00 : f32
      %41 = vector.broadcast %cst_34 : f32 to vector<8x1xf32>
      %c0_35 = arith.constant 0 : index
      %c0_36 = arith.constant 0 : index
      %42 = vector.load %arg9[%c0_35, %c0_36] : memref<8x1xf32, #tpu.memory_space<vmem>>, vector<8x1xf32>
      tpu.vector_store %arg9[%c0_35, %c0_36], %41 {strides = array<i32>} : memref<8x1xf32, #tpu.memory_space<vmem>>, vector<8x1xf32>,
      %cst_37 = arith.constant 0.000000e+00 : f32
      %43 = vector.broadcast %cst_37 : f32 to vector<8x32xf32>
      %c0_38 = arith.constant 0 : index
      %c0_39 = arith.constant 0 : index
      %44 = vector.load %arg10[%c0_38, %c0_39] : memref<8x32xf32, #tpu.memory_space<vmem>>, vector<8x32xf32>
      tpu.vector_store %arg10[%c0_38, %c0_39], %43 {strides = array<i32>} : memref<8x32xf32, #tpu.memory_space<vmem>>, vector<8x32xf32>,
    } else {
    }
    %c0 = arith.constant 0 : index
    %c0_1 = arith.constant 0 : index
    %3 = vector.load %arg7[%c0, %c0_1] : memref<8x32xf32, #tpu.memory_space<vmem>>, vector<8x32xf32>
    %c0_2 = arith.constant 0 : index
    %c0_3 = arith.constant 0 : index
    %c0_4 = arith.constant 0 : index
    %4 = vector.load %arg4[%c0_2, %c0_3, %c0_4] : memref<1x8x32xf32, #tpu.memory_space<vmem>>, vector<1x8x32xf32>
    %5 = vector.shape_cast %4 : vector<1x8x32xf32> to vector<8x32xf32>
    %c0_5 = arith.constant 0 : index
    %c0_6 = arith.constant 0 : index
    %c0_7 = arith.constant 0 : index
    %6 = vector.load %arg5[%c0_5, %c0_6, %c0_7] : memref<1x8x32xf32, #tpu.memory_space<vmem>>, vector<1x8x32xf32>
    %7 = vector.shape_cast %6 : vector<1x8x32xf32> to vector<8x32xf32>
    %cst = arith.constant dense<0.000000e+00> : vector<8x8xf32>
    %8 = tpu.matmul %3, %5, %cst {dimension_numbers = #tpu.dot_dimension_numbers<[1], [1], [0], [0], [0, 0, 1, 0], [], []>} : vector<8x32xf32>, vector<8x32xf32>, vector<8x8xf32> -> vector<8x8xf32>
    %c0_8 = arith.constant 0 : index
    %c0_9 = arith.constant 0 : index
    %9 = vector.load %arg8[%c0_8, %c0_9] : memref<8x1xf32, #tpu.memory_space<vmem>>, vector<8x1xf32>
    %cst_10 = arith.constant dense<0xFF800000> : vector<8xf32>
    %10 = vector.multi_reduction <maximumf>, %8, %cst_10 [1] : vector<8x8xf32> to vector<8xf32>
    %11 = vector.shape_cast %10 : vector<8xf32> to vector<8x1xf32>
    %12 = arith.maximumf %9, %11 : vector<8x1xf32>
    %13 = arith.subf %9, %12 : vector<8x1xf32>
    %14 = math.exp %13 : vector<8x1xf32>
    %15 = vector.broadcast %12 : vector<8x1xf32> to vector<8x8xf32>
    %16 = arith.subf %8, %15 : vector<8x8xf32>
    %17 = math.exp %16 : vector<8x8xf32>
    %cst_11 = arith.constant dense<0.000000e+00> : vector<8xf32>
    %18 = vector.multi_reduction <add>, %17, %cst_11 [1] : vector<8x8xf32> to vector<8xf32>
    %19 = vector.shape_cast %18 : vector<8xf32> to vector<8x1xf32>
    %c0_12 = arith.constant 0 : index
    %c0_13 = arith.constant 0 : index
    %20 = vector.load %arg9[%c0_12, %c0_13] : memref<8x1xf32, #tpu.memory_space<vmem>>, vector<8x1xf32>
    %21 = arith.mulf %14, %20 : vector<8x1xf32>
    %22 = arith.addf %21, %19 : vector<8x1xf32>
    %c0_14 = arith.constant 0 : index
    %c0_15 = arith.constant 0 : index
    %23 = vector.load %arg9[%c0_14, %c0_15] : memref<8x1xf32, #tpu.memory_space<vmem>>, vector<8x1xf32>
    tpu.vector_store %arg9[%c0_14, %c0_15], %22 {strides = array<i32>} : memref<8x1xf32, #tpu.memory_space<vmem>>, vector<8x1xf32>,
    %c0_16 = arith.constant 0 : index
    %c0_17 = arith.constant 0 : index
    %24 = vector.load %arg10[%c0_16, %c0_17] : memref<8x32xf32, #tpu.memory_space<vmem>>, vector<8x32xf32>
    %25 = vector.broadcast %14 : vector<8x1xf32> to vector<8x32xf32>
    %26 = arith.mulf %25, %24 : vector<8x32xf32>
    %cst_18 = arith.constant dense<0.000000e+00> : vector<8x32xf32>
    %27 = tpu.matmul %17, %7, %cst_18 {dimension_numbers = #tpu.dot_dimension_numbers<[1], [0], [0], [1], [0, 0, 1, 1], [], []>} : vector<8x8xf32>, vector<8x32xf32>, vector<8x32xf32> -> vector<8x32xf32>
    %28 = arith.addf %26, %27 : vector<8x32xf32>
    %c0_19 = arith.constant 0 : index
    %c0_20 = arith.constant 0 : index
    %29 = vector.load %arg10[%c0_19, %c0_20] : memref<8x32xf32, #tpu.memory_space<vmem>>, vector<8x32xf32>
    tpu.vector_store %arg10[%c0_19, %c0_20], %28 {strides = array<i32>} : memref<8x32xf32, #tpu.memory_space<vmem>>, vector<8x32xf32>,
    %c0_21 = arith.constant 0 : index
    %c0_22 = arith.constant 0 : index
    %30 = vector.load %arg8[%c0_21, %c0_22] : memref<8x1xf32, #tpu.memory_space<vmem>>, vector<8x1xf32>
    tpu.vector_store %arg8[%c0_21, %c0_22], %12 {strides = array<i32>} : memref<8x1xf32, #tpu.memory_space<vmem>>, vector<8x1xf32>,
    %c0_i32_23 = arith.constant 0 : i32
    %31 = arith.cmpi eq, %arg2, %c0_i32_23 : i32
    %32 = arith.extui %31 : i1 to i32
    %c0_i32_24 = arith.constant 0 : i32
    %33 = arith.cmpi ne, %32, %c0_i32_24 : i32
    scf.if %33 {
      %c0_25 = arith.constant 0 : index
      %c0_26 = arith.constant 0 : index
      %34 = vector.load %arg9[%c0_25, %c0_26] : memref<8x1xf32, #tpu.memory_space<vmem>>, vector<8x1xf32>
      %cst_27 = arith.constant 1.000000e+00 : f32
      %35 = vector.broadcast %cst_27 : f32 to vector<8x1xf32>
      %36 = arith.divf %35, %34 : vector<8x1xf32>
      %c0_28 = arith.constant 0 : index
      %c0_29 = arith.constant 0 : index
      %37 = vector.load %arg10[%c0_28, %c0_29] : memref<8x32xf32, #tpu.memory_space<vmem>>, vector<8x32xf32>
      %38 = vector.broadcast %36 : vector<8x1xf32> to vector<8x32xf32>
      %39 = arith.mulf %37, %38 : vector<8x32xf32>
      %c0_30 = arith.constant 0 : index
      %c0_31 = arith.constant 0 : index
      %c0_32 = arith.constant 0 : index
      %40 = vector.load %arg6[%c0_30, %c0_31, %c0_32] : memref<1x8x32xf32, #tpu.memory_space<vmem>>, vector<1x8x32xf32>
      %41 = vector.shape_cast %40 : vector<1x8x32xf32> to vector<8x32xf32>
      %42 = vector.shape_cast %39 : vector<8x32xf32> to vector<1x8x32xf32>
      tpu.vector_store %arg6[%c0_30, %c0_31, %c0_32], %42 {strides = array<i32>} : memref<1x8x32xf32, #tpu.memory_space<vmem>>, vector<1x8x32xf32>,
    } else {
    }
    return
  }
  func.func @transform_0(%arg0: i32, %arg1: i32, %arg2: i32) -> (i32, i32, i32) {
    %c0_i32 = arith.constant 0 : i32
    %c0_i32_0 = arith.constant 0 : i32
    return %arg0, %arg1, %c0_i32 : i32, i32, i32
  }
  func.func @transform_1(%arg0: i32, %arg1: i32, %arg2: i32) -> (i32, i32, i32) {
    %c0_i32 = arith.constant 0 : i32
    %c0_i32_0 = arith.constant 0 : i32
    return %arg0, %arg2, %c0_i32 : i32, i32, i32
  }
  func.func @transform_2(%arg0: i32, %arg1: i32, %arg2: i32) -> (i32, i32, i32) {
    %c0_i32 = arith.constant 0 : i32
    %c0_i32_0 = arith.constant 0 : i32
    return %arg0, %arg2, %c0_i32 : i32, i32, i32
  }
  func.func @transform_3(%arg0: i32, %arg1: i32, %arg2: i32) -> (i32, i32, i32) {
    %c0_i32 = arith.constant 0 : i32
    %c0_i32_0 = arith.constant 0 : i32
    return %arg0, %arg1, %c0_i32 : i32, i32, i32
  }
}

</mosaic_0001>

<bundles_post_ra>
// kernel: tpu_custom_call.1
= control target key start
LH: loop header
LB: loop body
LE: loop exit
PB: predicated region body
PF: predicated region fallthrough
CT: control target
= control target key end

     0   :  { %s1247_s0 = inlined_call_operand.hbm [shape: f32[2,8,32], index: 0, kind: input, shape index: {}]   ;;  %s1248_s1 = inlined_call_operand.hbm [shape: f32[2,8,32], index: 1, kind: input, shape index: {}]   ;;  %s1249_s2 = inlined_call_operand.hbm [shape: f32[2,8,32], index: 2, kind: input, shape index: {}]   ;;  %s1250_s3 = inlined_call_operand.hbm [shape: f32[2,8,32], index: 3, kind: output, shape index: {}]  }
   0x1   :  { %1256 = sst [smem:[#allocation19_spill]] %s1248_s1 }
   0x2   :  { %8 = vsyncpa [#allocation7], 0 }
   0x3   :  { %10 = vsyncpa [#allocation7 + $0x1], 0 }
   0x4   :  { %11 = vsyncpa [#allocation10], 0 }
   0x5   :  { %13 = vsyncpa [#allocation10 + $0x1], 0 }
   0x6   :  { %14 = vsyncpa [#allocation8], 0 }
   0x7   :  { %16 = vsyncpa [#allocation8 + $0x1], 0  ;;  %s970_s12 = smov 0   ;;  %s972_s13 = smov 0  }
   0x8   :  { %s974_s14 = smov 0   ;;  %s976_s15 = smov 0  }
   0x9   :  { %s978_s16 = smov 0   ;;  %s980_s17 = smov 0  }
   0xa LB: > { %1257 = sst [smem:[#allocation16_spill]] %s936_s16  ;;  %s1001_s18 = sadd.s32 4294967295, %s940_s17   ;;  %s940_s17 = sphi %s980_s17, %s22_s17   ;;  %s936_s16 = sphi %s978_s16, %s1278_s16   ;;  %s932_s15 = sphi %s976_s15, %s1277_s15   ;;  %s928_s14 = sphi %s974_s14, %s1281_s14   ;;  %s924_s13 = sphi %s972_s13, %s1280_s13   ;;  %s920_s12 = sphi %s970_s12, %s1279_s12  }
   0xb   : > { %s645_s19 = sadd.s32 4294967294, %s940_s17   ;;  %s41_s20 = sadd.s32 1, %s936_s16 }
   0xc   : > { %s50_s21 = sadd.s32 1, %s928_s14  ;;  %p43_p0 = scmp.ge.s32.totalorder %s41_s20, 2 }
   0xd   : > { %p57_p1 = scmp.ne.s32.totalorder %s928_s14, %s924_s13  ;;  %p58_p2 = scmp.eq.s32.totalorder %s940_s17, 0 }
   0xe   : > { %p63_p3 = scmp.ne.s32.totalorder %s924_s13, %s920_s12  ;;  %s1283_s20 = smov (%p43_p0, %s41_s20), 0 }
   0xf   : > { %1258 = sst [smem:[#allocation17_spill]] %s1283_s20  ;;  %p1013_p4 = por %p58_p2, %p57_p1 }
  0x10   : > { %p64_p5 = scmp.eq.s32.totalorder %s1001_s18, 0  ;;  %s45_s23 = ssub.s32 %s936_s16, %s1283_s20 }
  0x11   : > { %p145_p6 = scmp.eq.s32.totalorder %s1001_s18, 1  ;;  %p48_p7 = scmp.eq.s32.totalorder %s45_s23, 0 }
  0x12   : > { %p1021_p8 = por %p64_p5, %p63_p3  ;;  %p151_p10 = scmp.eq.s32.totalorder %s645_s19, 1 }
  0x13   : > { %p1025_p9 = por %p145_p6, %p57_p1  ;;  %p702_p13 = scmp.lt.s32.totalorder %s940_s17, 2 }
  0x14   : > { %s1260_s24 = scalar_select %p1021_p8, 1, 0 }
  0x15   : > { %s1261_s25 = scalar_select %p1025_p9, 1, 0 }
  0x16   : > { %s1030_s26 = scalar_select %p48_p7, %s928_s14, %s50_s21  }
  0x17   : > { %p1032_p11 = por %p151_p10, %p63_p3  ;;  %s171_s28 = sand.u32 1, %s928_s14  }
  0x18   : > { %1262 = sst [smem:[#allocation18_spill]] %s1030_s26  ;;  %s1041_s29 = sshll.u32 %s171_s28, 3 }
  0x19   : > { %s1263_s27 = scalar_select %p1032_p11, 1, 0 }
  0x1a   : > { %s1044_s30 = sshll.u32 %s936_s16, 7  ;;  %p1048_p0 = pnand %p702_p13, %p1013_p4 }
  0x1b   : > { %s190_s5 = sand.u32 1, %s940_s17   ;;  %s1265_s1 = sld [smem:[#allocation19_spill]] }
  0x1c   : > { %s1264_s4 = scalar_select %p1048_p0, 1, 0 }
  0x1d   : > { %s194_s9 = scalar_lea.vmem [#allocation9], %s1041_s29  ;;  %s1064_s11 = scalar_lea.sflag [#allocation10], %s190_s5 }
  0x1e   : > { %s202_s10 = sshll.u32 %s194_s9, 4  ;;  %p1070_p4 = pneg %p1048_p0  ;;  %s1061_s10 = int_to_ptr.vmem [resolvable:$true] %s202_s10 }
  0x21   : > { %s1057_s8 = scalar_lea.hbm %s1265_s1, %s1044_s30  ;;  %s769_s6 = scalar_lea.hbm %s1265_s1, 256 }
  0x22   : > { %s764_s19 = scalar_lea.hbm %s1057_s8, 128  ;;  %p770_p7 = scmp.lt.u32.totalorder %s1057_s8, %s1265_s1 }
  0x23   : > { %p765_p3 = scmp.ne.s32.totalorder %s1057_s8, %s764_s19  ;;  %p771_p10 = scmp.lt.u32.totalorder %s769_s6, %s764_s19 }
  0x24   : > { %p773_p12 = scmp.lt.u32.totalorder %s764_s19, %s1057_s8 }
  0x25   : > { %p767_p5 = pnand %p1070_p4, %p765_p3  ;;  %p772_p13 = por %p771_p10, %p770_p7 }
  0x27   : > { %p768_p6 = pneg %p767_p5  ;;  %p774_p1 = por %p773_p12, %p772_p13 }
  0x29   : > { %p775_p2 = pnand %p774_p1, %p768_p6 }
  0x2b   : > { %778 = shalt.err (!%p775_p2)
}
  0x2c   : > { %s779_s5 = scalar_lea.vmem %s1061_s10, 128  ;;  %s942_s22 = smov [#allocation9]  }
  0x2d   : > { %p780_p3 = scmp.ne.s32.totalorder %s1061_s10, %s779_s5  ;;  %s784_s23 = sshll.u32 %s942_s22, 4  ;;  %s785_s23 = int_to_ptr.vmem [resolvable:$false] %s784_s23 }
  0x2e   : > { %s786_s7 = scalar_lea.vmem %s785_s23, 256  ;;  %p787_p9 = scmp.lt.s32.totalorder %s1061_s10, %s785_s23 }
  0x2f   : > { %p782_p5 = pnand %p780_p3, %p1070_p4  ;;  %p788_p8 = scmp.lt.s32.totalorder %s786_s7, %s779_s5 }
  0x31   : > { %p783_p11 = pneg %p782_p5  ;;  %p789_p7 = por %p788_p8, %p787_p9 }
  0x33   : > { %p790_p10 = pnand %p789_p7, %p783_p11 }
  0x35   : > { %793 = shalt.err (!%p790_p10)
}
  0x36   : > { %694 = dma.hbm_to_vmem [thread:$0]  (!%p1048_p0), %s1057_s8, 128, %s1061_s10, %s1064_s11  }
  0x37   : > { %p1267_p12 = scmp.lt.s32.totalorder %s940_s17, 3  ;;  %p1268_p1 = scmp.ge.s32.totalorder %s940_s17, 1 }
  0x38   : > { %s1106_s5 = scalar_lea.hbm %s1247_s0, %s1044_s30  ;;  %s175_s22 = scalar_lea.vmem [#allocation6], %s1041_s29 }
  0x39   : > { %p1098_p2 = pnand %p1268_p1, %p1267_p12  ;;  %s183_s23 = sshll.u32 %s175_s22, 4  ;;  %s1109_s23 = int_to_ptr.vmem [resolvable:$true] %s183_s23 }
  0x3a   : > { %s1115_s7 = scalar_lea.hbm %s1249_s2, %s1044_s30  ;;  %s172_s1 = scalar_lea.sflag [#allocation7], %s171_s28 }
  0x3b   : > { %s1269_s19 = scalar_select %p1098_p2, 1, 0 }
  0x3c   : > { %s794_s20 = scalar_lea.hbm %s1106_s5, 128  ;;  %s799_s16 = scalar_lea.hbm %s1247_s0, 256 }
  0x3d   : > { %p795_p8 = scmp.ne.s32.totalorder %s1106_s5, %s794_s20  ;;  %p800_p6 = scmp.lt.u32.totalorder %s1106_s5, %s1247_s0 }
  0x3e   : > { %p801_p13 = scmp.lt.u32.totalorder %s799_s16, %s794_s20  ;;  %p803_p5 = scmp.lt.u32.totalorder %s794_s20, %s1106_s5 }
  0x3f   : > { %p797_p9 = pnand %p795_p8, %p1070_p4 }
  0x40   : > { %p802_p3 = por %p801_p13, %p800_p6 }
  0x41   : > { %p798_p11 = pneg %p797_p9 }
  0x42   : > { %p804_p7 = por %p803_p5, %p802_p3 }
  0x44   : > { %p805_p10 = pnand %p804_p7, %p798_p11 }
  0x46   : > { %808 = shalt.err (!%p805_p10)
}
  0x47   : > { %s809_s28 = scalar_lea.vmem %s1109_s23, 128  ;;  %s943_s30 = smov [#allocation6]  }
  0x48   : > { %p810_p12 = scmp.ne.s32.totalorder %s1109_s23, %s809_s28  ;;  %s814_s8 = sshll.u32 %s943_s30, 4  ;;  %s815_s8 = int_to_ptr.vmem [resolvable:$false] %s814_s8 }
  0x49   : > { %s816_s26 = scalar_lea.vmem %s815_s8, 256  ;;  %p817_p9 = scmp.lt.s32.totalorder %s1109_s23, %s815_s8 }
  0x4a   : > { %p812_p1 = pnand %p810_p12, %p1070_p4  ;;  %p818_p2 = scmp.lt.s32.totalorder %s816_s26, %s809_s28 }
  0x4c   : > { %p813_p8 = pneg %p812_p1  ;;  %p819_p6 = por %p818_p2, %p817_p9 }
  0x4e   : > { %p820_p13 = pnand %p819_p6, %p813_p8 }
  0x50   : > { %823 = shalt.err (!%p820_p13)
}
  0x51   : > { %691 = dma.hbm_to_vmem [thread:$0]  (!%p1048_p0), %s1106_s5, 128, %s1109_s23, %s172_s1  }
  0x52   : > { %s213_s16 = scalar_lea.vmem [#allocation11], %s1041_s29  ;;  %s824_s10 = scalar_lea.hbm %s1115_s7, 128 }
  0x53   : > { %s221_s20 = sshll.u32 %s213_s16, 4  ;;  %p825_p11 = scmp.ne.s32.totalorder %s1115_s7, %s824_s10  ;;  %s222_s20 = int_to_ptr.vmem [resolvable:$true] %s221_s20 }
  0x54   : > { %s829_s22 = scalar_lea.hbm %s1249_s2, 256  ;;  %p830_p5 = scmp.lt.u32.totalorder %s1115_s7, %s1249_s2 }
  0x55   : > { %p827_p2 = pnand %p825_p11, %p1070_p4  ;;  %p831_p7 = scmp.lt.u32.totalorder %s829_s22, %s824_s10 }
  0x56   : > { %p833_p12 = scmp.lt.u32.totalorder %s824_s10, %s1115_s7 }
  0x57   : > { %p828_p3 = pneg %p827_p2  ;;  %p832_p10 = por %p831_p7, %p830_p5 }
  0x59   : > { %p834_p1 = por %p833_p12, %p832_p10 }
  0x5b   : > { %p835_p8 = pnand %p834_p1, %p828_p3 }
  0x5d   : > { %838 = shalt.err (!%p835_p8)
}
  0x5e   : > { %s839_s1 = scalar_lea.vmem %s222_s20, 128  ;;  %s944_s29 = smov [#allocation11]  }
  0x5f   : > { %p840_p9 = scmp.ne.s32.totalorder %s222_s20, %s839_s1  ;;  %s844_s5 = sshll.u32 %s944_s29, 4  ;;  %s845_s5 = int_to_ptr.vmem [resolvable:$false] %s844_s5 }
  0x60   : > { %s846_s23 = scalar_lea.vmem %s845_s5, 256  ;;  %p847_p11 = scmp.lt.s32.totalorder %s222_s20, %s845_s5 }
  0x61   : > { %p842_p6 = pnand %p840_p9, %p1070_p4  ;;  %p848_p2 = scmp.lt.s32.totalorder %s846_s23, %s839_s1 }
  0x63   : > { %p843_p13 = pneg %p842_p6  ;;  %p849_p0 = por %p848_p2, %p847_p11 }
  0x65   : > { %p850_p5 = pnand %p849_p0, %p843_p13 }
  0x67   : > { %853 = shalt.err (!%p850_p5)
}
  0x68   : > { %p1270_p7 = scmp.ne.s32.totalorder %s1264_s4, 0  ;;  %p1271_p3 = scmp.ne.s32.totalorder %s1269_s19, 0 }
  0x69   : > { %s1162_s21 = sand.u32 (!%p1271_p3), 1, %s924_s13   ;;  %p1272_p0 = scmp.ne.s32.totalorder (!%p1271_p3), %s1260_s24, 0 }
  0x6a   : > { %697 = dma.hbm_to_vmem [thread:$0]  (!%p1270_p7), %s1115_s7, 128, %s222_s20, %s1064_s11  }
  0x6b   : > { %230 = sbr.rel (%p1271_p3) target bundleno = 937 (0x3a9), region = 32  ;;  %s1165_s8 = sshll.u32 (!%p1271_p3), %s1162_s21, 3 }
  0x6c   : > { %s233_s26 = scalar_lea.sflag (!%p1271_p3), [#allocation7], %s1162_s21  ;;  %s236_s16 = scalar_lea.vmem (!%p1271_p3), [#allocation6], %s1165_s8 }
  0x72   : > { %907 = dma.done.wait (%p1272_p0), %s233_s26, 128  }
  0x73   : > { %909 = vsyncadd (%p1272_p0), %s233_s26, 4294967168  ;;  %s241_s4 = sand.u32 1, %s1001_s18   ;;  %s245_s19 = scalar_lea.vmem [#allocation9], %s1165_s8 }
  0x74   : > { %s242_s11 = scalar_lea.sflag [#allocation10], %s241_s4 }
  0x75   : > { %911 = dma.done.wait (%p1272_p0), %s242_s11, 256  }
  0x76   : > { %913 = vsyncadd (%p1272_p0), %s242_s11, 4294967040  ;;  %vm293_vm0 = vcmask 261120   ;;  %v945_v0 = vmov 0.0   ;;  %vm946_vm1 = vmmov 0   ;;  %v291_v1 = vld [vmem:[%s236_s16] sm:$0xff]  ;;  %v300_v2 = vld [vmem:[%s245_s19] sm:$0xff] }
  0x77   : > { %670 = vmatprep.subr.mxu0 %v945_v0  ;;  %298 = vst.msk [vmem:[#allocation5] sm:$0xff] %vm293_vm0, %v945_v0  ;;  %672 = vmatprep.mubr.msk.f32.mxu0 %vm946_vm1, %v945_v0  ;;  %v292_v3 = vmul.f32 0.17677669, %v291_v1  ;;  %vm295_vm2 = vcmask 7168   ;;  %v947_v5 = vmov -inf   ;;  %vm380_vm3 = vcmask 64512  }
  0x78   : > { %675 = vmatprep.subr.mxu1 %v945_v0  ;;  %677 = vmatprep.mubr.msk.f32.mxu1 %vm946_vm1, %v945_v0  ;;  %296 = vst.msk [vmem:[#allocation3] sm:$0xff] %vm295_vm2, %v947_v5  ;;  %297 = vst.msk [vmem:[#allocation4] sm:$0xff] %vm295_vm2, %v945_v0  ;;  %v948_v9 = vmov 0   ;;  %s254_s18 = scalar_lea.vmem [#allocation11], %s1165_s8  ;;  %s663_s24 = sshll.u32 %s932_s15, 7 }
  0x79   : > { %671 = vmatpush3.xpose.msk.msra.mxu0 %vm293_vm0, %v300_v2  ;;  %294 = vst.msk [vmem:[#allocation2] sm:$0xff] %vm293_vm0, %v292_v3  ;;  %756 = vset.pattern.permute.xlu0 %v948_v9  ;;  %v301_v14 = vld [vmem:[%s254_s18] sm:$0xff]  ;;  %s286_s7 = scalar_lea.vmem [#allocation12], %s1165_s8  ;;  %s1197_s9 = scalar_lea.hbm %s1250_s3, %s663_s24 }
  0x7a   : > { %757 = vset.pattern.permute.xlu1 %v948_v9  ;;  %676 = vmatpush3.msra.mxu1 %v301_v14  ;;  %s516_s20 = sshll.u32 %s286_s7, 4  ;;  %s502_s22 = scalar_lea.sflag [#allocation8], %s1162_s21  ;;  %s1199_s20 = int_to_ptr.vmem [resolvable:$true] %s516_s20 }
  0x7b   : > { %s854_s28 = scalar_lea.vmem %s1199_s20, 128  ;;  %p1273_p10 = scmp.ne.s32.totalorder %s1261_s25, 0 }
  0x7c   : > { %p855_p4 = scmp.ne.s32.totalorder %s1199_s20, %s854_s28  ;;  %s949_s15 = smov [#allocation12]  }
  0x7d   : > { %s858_s30 = sshll.u32 %s949_s15, 4  ;;  %s859_s30 = int_to_ptr.vmem [resolvable:$false] %s858_s30 }
  0x7e   : > { %v404_v28 = vld [vmem:[#allocation5] sm:$0xff]  ;;  %p856_p12 = pnand %p855_p4, %p1273_p10  ;;  %s860_s1 = scalar_lea.vmem %s859_s30, 256 }
  0x7f   : > { %v379_v10 = vld [vmem:[#allocation3] sm:$0xff]  ;;  %v399_v22 = vld [vmem:[#allocation4] sm:$0xff]  ;;  %p861_p8 = scmp.lt.s32.totalorder %s1199_s20, %s859_s30  ;;  %p862_p9 = scmp.lt.s32.totalorder %s860_s1, %s854_s28 }
  0x80   : > { %v299_v4 = vld [vmem:[#allocation2] sm:$0xff]  ;;  %p857_p1 = pneg %p856_p12 }
  0x81   : > { %673 = vmatmul.mubr.msk.f32.vlgmr.msra.gmra.mrb[0].mxu0 %vm293_vm0, %v299_v4  ;;  %p863_p6 = por %p862_p9, %p861_p8 }
  0x83   : > { %p864_p13 = pnand %p863_p6, %p857_p1 }
 0x154   : > { %v375_v6 = vpop.f32.mrb[0].mxu0 }
 0x155   : > { %v674_v7 = vpop.f32.mrb[1].mxu0  ;;  %v381_v8 = vsel %vm380_vm3, %v375_v6, -inf }
 0x156   : > { %382 = vmax.xlane.f32.xlu0 %v381_v8 }
 0x1e3   : > { %v383_v11 = vpop.xlane.xlu0 %382 }
 0x1e4   : > { %v384_v12 = vmax.f32 %v379_v10, %v383_v11 }
 0x1e6   : > { %v385_v13 = vsub.f32 %v379_v10, %v384_v12  ;;  %486 = vst.msk [vmem:[#allocation3] sm:$0xff] %vm295_vm2, %v384_v12  ;;  %390 = vperm.xlu0 %756, %v384_v12  }
 0x1e8   : > { %v386_v20 = vmul.f32 1.442695, %v385_v13 }
 0x265   : > { %v391_v15 = vpop.permute.xlu0 %390 }
 0x266   : > { %v393_v16 = vsub.f32 %v375_v6, %v391_v15 }
 0x268   : > { %v394_v17 = vmul.f32 1.442695, %v393_v16 }
 0x26a   : > { %758 = vpow2.f32 %v394_v17 }
 0x26b   : > { %760 = vpow2.f32 %v386_v20 }
 0x274   : > { %v759_v18 = vpop.eup %758 }
 0x275   : > { %678 = vmatmul.mubr.msk.f32.vlgmr.msra.gmra.mrb[0].mxu1 %vm380_vm3, %v759_v18  ;;  %v396_v19 = vsel %vm380_vm3, %v759_v18, 0.0  ;;  %v761_v21 = vpop.eup %760 }
 0x276   : > { %397 = vadd.xlane.f32.xlu1 %v396_v19  ;;  %v400_v23 = vmul.f32 %v761_v21, %v399_v22 }
 0x287   : > { %407 = vperm.xlu1 %757, %v761_v21  }
 0x303   : > { %v398_v24 = vpop.xlane.xlu1 %397 }
 0x304   : > { %v401_v25 = vadd.f32 %v400_v23, %v398_v24 }
 0x306   : > { %403 = vst.msk [vmem:[#allocation4] sm:$0xff] %vm295_vm2, %v401_v25 }
 0x307   : > { %v408_v29 = vpop.permute.xlu1 %407 }
 0x308   : > { %v410_v30 = vmul.f32 %v408_v29, %v404_v28 }
 0x30d   : > { %v490_v26 = vld [vmem:[#allocation4] sm:$0xff] }
 0x30e   : > { %762 = vrcp.f32 %v490_v26 }
 0x318   : > { %v763_v27 = vpop.eup %762 }
 0x319   : > { %496 = vperm.xlu1 %757, %v763_v27  }
 0x348   : > { %v480_v31 = vpop.f32.mrb[0].mxu1 }
 0x349   : > { %v484_v32 = vadd.f32 %v480_v31, %v410_v30  ;;  %v679_v33 = vpop.f32.mrb[1].mxu1 }
 0x34b   : > { %485 = vst.msk [vmem:[#allocation5] sm:$0xff] %vm293_vm0, %v484_v32 }
 0x352   : > { %v493_v34 = vld [vmem:[#allocation5] sm:$0xff] }
 0x398   : > { %v497_v35 = vpop.permute.xlu1 %496 }
 0x399   : > { %v499_v36 = vmul.f32 %v497_v35, %v493_v34 }
 0x39b   : > { %500 = vst.msk [vmem:[%s286_s7] sm:$0xff] %vm293_vm0, %v499_v36 }
 0x39c   : > { %867 = shalt.err (!%p864_p13)
}
 0x39d   : > { %s868_s29 = scalar_lea.hbm %s1197_s9, 128  ;;  %s872_s21 = scalar_lea.hbm %s1250_s3, 256 }
 0x39e   : > { %p869_p11 = scmp.ne.s32.totalorder %s1197_s9, %s868_s29  ;;  %p873_p7 = scmp.lt.u32.totalorder %s1197_s9, %s1250_s3 }
 0x39f   : > { %p874_p3 = scmp.lt.u32.totalorder %s872_s21, %s868_s29  ;;  %p876_p4 = scmp.lt.u32.totalorder %s868_s29, %s1197_s9 }
 0x3a0   : > { %p870_p2 = pnand %p869_p11, %p1273_p10 }
 0x3a1   : > { %p875_p0 = por %p874_p3, %p873_p7 }
 0x3a2   : > { %p871_p5 = pneg %p870_p2 }
 0x3a3   : > { %p877_p12 = por %p876_p4, %p875_p0 }
 0x3a5   : > { %p878_p1 = pnand %p877_p12, %p871_p5 }
 0x3a7   : > { %881 = shalt.err (!%p878_p1)
}
 0x3a8   : > { %686 = dma.vmem_to_hbm [thread:$0]  (%p1273_p10), %s1199_s20, 128, %s1197_s9, %s502_s22  }
 0x3a9 PF: > { %s528_s16 = sand.u32 1, %s920_s12   ;;  %p1274_p8 = scmp.ne.s32.totalorder %s1263_s27, 0 }
 0x3aa   : > { %p1275_p9 = scmp.ge.s32.totalorder %s940_s17, 2  ;;  %s529_s4 = scalar_lea.sflag [#allocation8], %s528_s16 }
 0x3ac   : > { %p699_p6 = pnand %p1275_p9, %p1274_p8 }
 0x3ae   : > { %915 = dma.done.wait (!%p699_p6), %s529_s4, 128  }
 0x3af   : > { %917 = vsyncadd (!%p699_p6), %s529_s4, 4294967168  ;;  %s22_s17 = sadd.s32 1, %s940_s17   ;;  %s1276_s25 = sld [smem:[#allocation18_spill]] }
 0x3b0   : > { %p19_p13 = scmp.ge.s32.totalorder %s22_s17, 4   ;;  %s1277_s15 = sld [smem:[#allocation16_spill]] }
 0x3b1   : > { %s1278_s16 = sld [smem:[#allocation17_spill]]  ;;  %s1279_s12 = smov %s924_s13 }
 0x3b2   : > { %s1280_s13 = smov %s928_s14  ;;  %21 = sbr.rel (!%p19_p13) target bundleno = 10 (0xa), region = 109 }
 0x3b5   : > { %s1281_s14 = smov %s1276_s25 }
 0x3b9   :  { %534 = vsyncpa [#allocation7], 1 }
 0x3ba   :  { %536 = vsyncpa [#allocation7 + $0x1], 1 }
 0x3bb   :  { %537 = vsyncpa [#allocation10], 1 }
 0x3bc   :  { %539 = vsyncpa [#allocation10 + $0x1], 1 }
 0x3bd   :  { %540 = vsyncpa [#allocation8], 1 }
 0x3be   :  { %542 = vsyncpa [#allocation8 + $0x1], 1 }

</bundles_post_ra>
